<compile_context>
chip_gen: v5e
topology: v5e:2x2
jax: 0.10.0
libtpu: 0.0.40
codegen_flags: <defaults>
</compile_context>

<pallas_src>
import numpy as np

import jax
import jax.numpy as jnp
from jax.experimental import pallas as pl
from jax.experimental.pallas import tpu as pltpu


def _round_up(x, m):
    return ((x + m - 1) // m) * m


def _fused_anchor_kernel(base_ref, lvl_ref, tbl_ref, out_ref):
    """Write one (TR, LANES) tile of the packed, lane-dense anchor slab.

    base_ref : SMEM i32 (num_chunks,)  slab-row-within-level of the chunk start
    lvl_ref  : SMEM i32 (num_chunks,)  level id per chunk (used only by index_map)
    tbl_ref  : VMEM f32 (1, 2, LANES)  [0] = const pattern (cx / baked cy / w / h)
                                        [1] = cy mask (P/H on cy lanes, 0 elsewhere)
    out_ref  : VMEM f32 (TR, LANES)
    """
    del lvl_ref                                   # consumed by the index_map only
    s = pl.program_id(0)
    tr = out_ref.shape[0]
    row = jax.lax.broadcasted_iota(jnp.int32, (tr, 1), 0) + base_ref[s]
    tbl = tbl_ref[...]                            # (1, 2, LANES)
    # out = const + mask * row_in_level  (cy = (y + 0.5)/H decomposed host-side)
    out_ref[...] = tbl[:, 0, :] + tbl[:, 1, :] * row.astype(jnp.float32)


class SSDAnchorGeneratorPallas:
    """JAX/Pallas re-implementation of SSDAnchorGenerator.forward."""

    def __init__(self, output_strides, aspect_ratios, min_ratio=0.1,
                 max_ratio=1.05, no_clipping=False, feature_map_sizes=None):
        scales = np.linspace(min_ratio, max_ratio,
                             len(output_strides) + 1).astype(np.float32)
        self.sizes = {}
        for i, s in enumerate(output_strides):
            self.sizes[s] = {
                "min": np.float32(scales[i]),
                "max": np.float32(np.sqrt(scales[i] * scales[i + 1])),
            }
        # torch.unique -> sorted unique values
        self.os_ar = {
            s: np.unique(np.asarray(ar, dtype=np.float32))
            for s, ar in zip(output_strides, aspect_ratios)
        }
        self.clip = not no_clipping
        self._cache = {}
        if feature_map_sizes is not None:
            levels = [(int(h), int(w), int(s))
                      for (h, w), s in zip(feature_map_sizes, output_strides)]
            self.precompute(levels)              # one fused pallas_call at init

    def num_anchors_per_os(self):
        return [2 + 2 * len(ar) for ar in self.os_ar.values()]

    # ---- static (w, h) table per anchor type --------------------------------
    def _wh_table(self, output_stride):
        min_s = self.sizes[output_stride]["min"]
        max_s = self.sizes[output_stride]["max"]
        ars = self.os_ar[output_stride]
        A = 2 + 2 * len(ars)
        wh = np.zeros((A, 2), np.float32)
        wh[0] = (min_s, min_s)
        wh[1] = (max_s, max_s)
        for j, r in enumerate(ars):
            rs = np.float32(np.sqrt(r))
            wh[2 + 2 * j] = (min_s * rs, min_s / rs)
            wh[3 + 2 * j] = (min_s / rs, min_s * rs)
        return wh

    # ---- per-level lane pattern (constants baked host-side) -----------------
    def _level_pattern(self, H, W, output_stride, LANES):
        wh = self._wh_table(output_stride)        # (A, 2) f32
        A = wh.shape[0]
        L = W * A * 4
        P = LANES // L                            # feature rows packed per slab row
        const = np.zeros((P, W, A, 4), np.float64)
        mask = np.zeros((P, W, A, 4), np.float64)
        cx = (np.arange(W, dtype=np.float64) + 0.5) / W
        const[:, :, :, 0] = cx[None, :, None]
        const[:, :, :, 1] = (np.arange(P, dtype=np.float64)[:, None, None] + 0.5) / H
        const[:, :, :, 2] = wh[None, None, :, 0]
        const[:, :, :, 3] = wh[None, None, :, 1]
        mask[:, :, :, 1] = float(P) / float(H)
        if self.clip:
            # cx, cy in (0,1) for valid rows -> only w/h ever clip; clipping is
            # folded into the constant table so the kernel needs no clamp.
            const[:, :, :, 0] = np.clip(const[:, :, :, 0], 0.0, 1.0)
            const[:, :, :, 2] = np.clip(const[:, :, :, 2], 0.0, 1.0)
            const[:, :, :, 3] = np.clip(const[:, :, :, 3], 0.0, 1.0)
        const_row = np.zeros((LANES,), np.float32)
        mask_row = np.zeros((LANES,), np.float32)
        const_row[:P * L] = const.reshape(-1).astype(np.float32)
        mask_row[:P * L] = mask.reshape(-1).astype(np.float32)
        return const_row, mask_row, A, L, P

    # ---- row-tile selection: grid-step overhead vs. padded writeback --------
    @staticmethod
    def _pick_row_tile(R_list, LANES):
        bytes_per_row = LANES * 4
        vmem_cap = 8 << 20            # output double-buffer budget (v7x-safe)
        step_cost = 0.35e-6           # ~600 cycles per grid step
        hbm_bw = 1.0e12               # order-of-magnitude HBM write bandwidth
        best_tr, best_cost = 8, None
        tr = 8
        while tr <= 4096:
            if 2 * tr * bytes_per_row > vmem_cap:
                break
            chunks = sum(-(-r // tr) for r in R_list)
            pad_rows = sum((-(-r // tr)) * tr - r for r in R_list)
            cost = chunks * step_cost + pad_rows * bytes_per_row / hbm_bw
            if best_cost is None or cost < best_cost:
                best_tr, best_cost = tr, cost
            tr *= 2
        return best_tr

    # ---- fused generation of an arbitrary set of levels ---------------------
    def _generate_levels(self, levels):
        if not levels:
            return []
        # Common lane width: multiple of 128 and >= every level's row length.
        Ls = []
        for (H, W, os_) in levels:
            A = 2 + 2 * len(self.os_ar[os_])
            Ls.append(W * A * 4)
        LANES = max(512, _round_up(max(Ls), 128))

        per_level, R_list = [], []
        tbl = np.zeros((len(levels), 2, LANES), np.float32)
        for li, (H, W, os_) in enumerate(levels):
            const_row, mask_row, A, L, P = self._level_pattern(H, W, os_, LANES)
            tbl[li, 0] = const_row
            tbl[li, 1] = mask_row
            R = -(-H // P)                        # slab rows for this level
            per_level.append((H, W, A, L, P, R))
            R_list.append(R)

        TR = self._pick_row_tile(R_list, LANES)

        # Chunk schedule: each grid step writes TR slab rows of one level.
        lvl_of_chunk, base_row, row_offsets = [], [], []
        total_rows = 0
        for li, (H, W, A, L, P, R) in enumerate(per_level):
            row_offsets.append(total_rows)
            n_chunks = -(-R // TR)
            for c in range(n_chunks):
                lvl_of_chunk.append(li)
                base_row.append(c * TR)
            total_rows += n_chunks * TR
        num_chunks = len(lvl_of_chunk)

        slab = pl.pallas_call(
            _fused_anchor_kernel,
            out_shape=jax.ShapeDtypeStruct((total_rows, LANES), jnp.float32),
            grid_spec=pltpu.PrefetchScalarGridSpec(
                num_scalar_prefetch=2,
                grid=(num_chunks,),
                in_specs=[pl.BlockSpec((1, 2, LANES),
                                       lambda s, base, lvl: (lvl[s], 0, 0))],
                out_specs=pl.BlockSpec((TR, LANES),
                                       lambda s, base, lvl: (s, 0)),
            ),
            compiler_params=pltpu.CompilerParams(
                dimension_semantics=(("parallel",) if num_chunks > 1
                                     else ("arbitrary",))),
        )(jnp.asarray(base_row, dtype=jnp.int32),
          jnp.asarray(lvl_of_chunk, dtype=jnp.int32),
          jnp.asarray(tbl))

        # Unpack each level: drop lane padding, unpack P rows/slab row, drop
        # padded trailing feature rows.  One-time cost; results are cached.
        out = []
        for li, (H, W, A, L, P, R) in enumerate(per_level):
            off = row_offsets[li]
            region = slab[off:off + R, :P * L]           # (R, P*L)
            anchors = region.reshape(R * P, L)[:H].reshape(H * W * A, 4)
            out.append(anchors)
        return out

    # ---- public API ----------------------------------------------------------
    def precompute(self, levels):
        levels = [tuple(int(v) for v in lv) for lv in levels]
        missing = [lv for lv in levels if lv not in self._cache]
        if missing:
            for lv, anc in zip(missing, self._generate_levels(missing)):
                self._cache[lv] = anc
        return [self._cache[lv] for lv in levels]

    def __call__(self, fm_height, fm_width, fm_output_stride):
        key = (int(fm_height), int(fm_width), int(fm_output_stride))
        if key not in self._cache:
            self._cache[key] = self._generate_levels([key])[0]
        return self._cache[key]


def _reference_anchors(gen, H, W, os_):
    """Pure-numpy mirror of the PyTorch module (for verification)."""
    min_s = gen.sizes[os_]["min"]
    max_s = gen.sizes[os_]["max"]
    ars = gen.os_ar[os_]
    rows = []
    for y in range(H):
        for x in range(W):
            cx = (x + 0.5) / W
            cy = (y + 0.5) / H
            rows.append([cx, cy, min_s, min_s])
            rows.append([cx, cy, max_s, max_s])
            for r in ars:
                rs = np.sqrt(r)
                rows.append([cx, cy, min_s * rs, min_s / rs])
                rows.append([cx, cy, min_s / rs, min_s * rs])
    out = np.asarray(rows, dtype=np.float32)
    if gen.clip:
        out = np.clip(out, 0.0, 1.0)
    return out


if __name__ == "__main__":
    # Deterministic construction; the module has no learned weights.
    _ = jax.random.PRNGKey(0)

    output_strides = [16, 32, 64]
    aspect_ratios = [[2.0, 3.0], [2.0, 3.0], [2.0]]
    # Feature-map sizes for a small (128x128) input -> all levels precomputed
    # at __init__ in a single fused pallas_call (grid over 3 chunks).
    feature_map_sizes = [(8, 8), (4, 4), (2, 2)]

    gen = SSDAnchorGeneratorPallas(output_strides, aspect_ratios,
                                   min_ratio=0.1, max_ratio=1.05,
                                   no_clipping=False,
                                   feature_map_sizes=feature_map_sizes)

    levels = [(h, w, s) for (h, w), s in zip(feature_map_sizes, output_strides)]
    # A lazily generated tall level (exercises the single-level fused path and
    # multi-row packing / cost-model tile selection).
    extra_level = (128, 2, 32)

    for (fm_height, fm_width, fm_output_stride) in levels + [extra_level]:
        anchors = gen(fm_height, fm_width, fm_output_stride)
        anchors = jax.block_until_ready(anchors)

        ref = _reference_anchors(gen, fm_height, fm_width, fm_output_stride)
        assert anchors.shape == ref.shape, (anchors.shape, ref.shape)
        np.testing.assert_allclose(np.asarray(anchors), ref,
                                   rtol=2e-6, atol=2e-6)

    print("KERNEL_OK")
</pallas_src>

<mosaic_0001>
module attributes {stable_mosaic.version = 11 : i64} {
  func.func @_fused_anchor_kernel(%arg0: i32, %arg1: memref<3xi32, #tpu.memory_space<smem>>, %arg2: memref<3xi32, #tpu.memory_space<smem>>, %arg3: memref<1x2x512xf32, #tpu.memory_space<vmem>>, %arg4: memref<8x512xf32, #tpu.memory_space<vmem>>) attributes {dimension_semantics = [#tpu.dimension_semantics<parallel>], iteration_bounds = array<i64: 3>, scalar_prefetch = 2 : i64, scratch_operands = 0 : i64, tpu.core_type = #tpu.core_type<tc>, window_params = [{transform_indices = @transform_0, window_bounds = array<i64: 1, 2, 512>}, {transform_indices = @transform_1, window_bounds = array<i64: 8, 512>}]} {
    %0 = tpu.iota {dimensions = array<i32: 0>} : vector<8x1xi32>
    %1 = arith.index_cast %arg0 : i32 to index
    %2 = memref.load %arg1[%1] : memref<3xi32, #tpu.memory_space<smem>>
    %3 = vector.broadcast %2 : i32 to vector<8x1xi32>
    %4 = arith.addi %0, %3 : vector<8x1xi32>
    %c0 = arith.constant 0 : index
    %c0_0 = arith.constant 0 : index
    %c0_1 = arith.constant 0 : index
    %5 = vector.load %arg3[%c0, %c0_0, %c0_1] : memref<1x2x512xf32, #tpu.memory_space<vmem>>, vector<1x2x512xf32>
    %6 = vector.extract_strided_slice %5 {offsets = [0, 0, 0], sizes = [1, 1, 512], strides = [1, 1, 1]} : vector<1x2x512xf32> to vector<1x1x512xf32>
    %7 = vector.shape_cast %6 : vector<1x1x512xf32> to vector<1x512xf32>
    %8 = vector.extract_strided_slice %5 {offsets = [0, 1, 0], sizes = [1, 1, 512], strides = [1, 1, 1]} : vector<1x2x512xf32> to vector<1x1x512xf32>
    %9 = vector.shape_cast %8 : vector<1x1x512xf32> to vector<1x512xf32>
    %10 = arith.sitofp %4 : vector<8x1xi32> to vector<8x1xf32>
    %11 = vector.broadcast %9 : vector<1x512xf32> to vector<8x512xf32>
    %12 = vector.broadcast %10 : vector<8x1xf32> to vector<8x512xf32>
    %13 = arith.mulf %11, %12 : vector<8x512xf32>
    %14 = vector.broadcast %7 : vector<1x512xf32> to vector<8x512xf32>
    %15 = arith.addf %14, %13 : vector<8x512xf32>
    %c0_2 = arith.constant 0 : index
    %c0_3 = arith.constant 0 : index
    %16 = vector.load %arg4[%c0_2, %c0_3] : memref<8x512xf32, #tpu.memory_space<vmem>>, vector<8x512xf32>
    tpu.vector_store %arg4[%c0_2, %c0_3], %15 {strides = array<i32>} : memref<8x512xf32, #tpu.memory_space<vmem>>, vector<8x512xf32>,
    return
  }
  func.func @transform_0(%arg0: i32, %arg1: memref<3xi32, #tpu.memory_space<smem>>, %arg2: memref<3xi32, #tpu.memory_space<smem>>) -> (i32, i32, i32) {
    %0 = arith.index_cast %arg0 : i32 to index
    %1 = memref.load %arg2[%0] : memref<3xi32, #tpu.memory_space<smem>>
    %c0_i32 = arith.constant 0 : i32
    %c0_i32_0 = arith.constant 0 : i32
    %c0_i32_1 = arith.constant 0 : i32
    return %1, %c0_i32, %c0_i32_0 : i32, i32, i32
  }
  func.func @transform_1(%arg0: i32, %arg1: memref<3xi32, #tpu.memory_space<smem>>, %arg2: memref<3xi32, #tpu.memory_space<smem>>) -> (i32, i32) {
    %c0_i32 = arith.constant 0 : i32
    %c0_i32_0 = arith.constant 0 : i32
    return %arg0, %c0_i32 : i32, i32
  }
}

</mosaic_0001>

<bundles_post_ra>
// kernel: tpu_custom_call.1
= control target key start
LH: loop header
LB: loop body
LE: loop exit
PB: predicated region body
PF: predicated region fallthrough
CT: control target
= control target key end

     0   :  { %s525_s18 = smov [#allocation3]   ;;  %s526_s19 = smov [#allocation4]   ;;  %s716_s0 = inlined_call_operand.hbm [shape: s32[3], index: 0, kind: input, shape index: {}]   ;;  %s717_s2 = inlined_call_operand.hbm [shape: f32[3,2,512], index: 2, kind: input, shape index: {}]   ;;  %s718_s3 = inlined_call_operand.hbm [shape: f32[24,512], index: 3, kind: output, shape index: {}]   ;;  %s719_s1 = inlined_call_operand.hbm [shape: s32[3], index: 1, kind: input, shape index: {}]  }
   0x1   :  { %s9_s14 = sshll.u32 %s716_s0, 4  ;;  %s14_s17 = sshll.u32 %s719_s1, 4  ;;  %s10_s14 = int_to_ptr.hbm [resolvable:$true] %s9_s14  ;;  %s15_s17 = int_to_ptr.hbm [resolvable:$true] %s14_s17 }
   0x2   :  { %12 = dma.hbm_to_smem %s10_s14, 16, %s525_s18, [#allocation2] }
   0x3   :  { %17 = dma.hbm_to_smem %s15_s17, 16, %s526_s19, [#allocation2] }
   0x4   :  { %487 = dma.done.wait [#allocation2], 32 }
   0x5   :  { %488 = vsyncadd [#allocation2], 4294967264 }
   0x6   :  { %20 = sfence }
   0x7   :  { %21 = vsyncpa [#allocation6], 0 }
   0x8   :  { %23 = vsyncpa [#allocation6 + $0x1], 0 }
   0x9   :  { %24 = vsyncpa [#allocation7], 0 }
   0xa   :  { %26 = vsyncpa [#allocation7 + $0x1], 0  ;;  %s553_s20 = smov 0   ;;  %s555_s0 = smov 0  }
   0xb   :  { %s557_s21 = smov 0   ;;  %s559_s1 = smov 0  }
   0xc   :  { %s561_s22 = smov 0   ;;  %s563_s23 = smov 0  }
   0xd   :  { %s565_s24 = smov 0  }
   0xe LB: > { %s587_s25 = sadd.s32 4294967295, %s523_s24   ;;  %s285_s26 = sadd.s32 4294967294, %s523_s24   ;;  %s523_s24 = sphi %s565_s24, %s734_s24   ;;  %s519_s23 = sphi %s563_s23, %s733_s23   ;;  %s515_s22 = sphi %s561_s22, %s732_s22   ;;  %s511_s1 = sphi %s559_s1, %s731_s1   ;;  %s507_s21 = sphi %s557_s21, %s730_s21   ;;  %s503_s0 = sphi %s555_s0, %s729_s0   ;;  %s499_s20 = sphi %s553_s20, %s728_s20  }
   0xf   : > { %s591_s27 = sadd.s32 1, %s523_s24   ;;  %s36_s28 = sld [smem:[#allocation4 + %s523_s24]] }
  0x10   : > { %s37_s29 = sld [smem:[#allocation4 + %s591_s27]]  ;;  %s41_s30 = sadd.s32 1, %s519_s23 }
  0x11   : > { %p48_p0 = scmp.ne.s32.totalorder %s519_s23, %s515_s22  ;;  %p49_p1 = scmp.eq.s32.totalorder %s523_s24, 0 }
  0x12   : > { %p54_p2 = scmp.ne.s32.totalorder %s515_s22, %s511_s1  ;;  %p55_p3 = scmp.eq.s32.totalorder %s587_s25, 0 }
  0x13   : > { %p601_p4 = por %p49_p1, %p48_p0  ;;  %s64_s5 = ssub.s32 %s523_s24, %s591_s27 }
  0x14   : > { %p607_p5 = por %p55_p3, %p54_p2  ;;  %p65_p6 = scmp.eq.s32.totalorder %s64_s5, 0 }
  0x15   : > { %s67_s7 = sadd.s32 1, %s507_s21  ;;  %p77_p7 = scmp.ne.s32.totalorder %s507_s21, %s503_s0 }
  0x16   : > { %s38_s8 = ssub.s32 %s36_s28, %s37_s29  ;;  %p78_p8 = scmp.eq.s32.totalorder %s587_s25, 2 }
  0x17   : > { %p39_p9 = scmp.eq.s32.totalorder %s38_s8, 0  ;;  %p83_p10 = scmp.ne.s32.totalorder %s503_s0, %s499_s20 }
  0x18   : > { %s618_s9 = scalar_select %p65_p6, %s507_s21, %s67_s7  }
  0x19   : > { %s621_s10 = scalar_select %p39_p9, %s519_s23, %s41_s30  }
  0x1a   : > { %p623_p11 = por %p78_p8, %p77_p7  ;;  %p84_p12 = scmp.eq.s32.totalorder %s285_s26, 2 }
  0x1b   : > { %722 = sst [smem:[#allocation14_spill]] %s621_s10  ;;  %p317_p13 = scmp.lt.s32.totalorder %s523_s24, 3 }
  0x1c   : > { %p628_p0 = por %p84_p12, %p83_p10  ;;  %s104_s13 = sand.u32 1, %s519_s23  }
  0x1d   : > { %s288_s14 = sshll.u32 %s104_s13, 3  ;;  %p635_p1 = pnand %p317_p13, %p601_p4 }
  0x1e   : > { %s301_s16 = scalar_select %p601_p4, [#allocation4], [#allocation9] }
  0x1f   : > { %s302_s17 = scalar_select %p601_p4, %s523_s24, 0 }
  0x20   : > { %s736_s16 = smov (!%p317_p13, %s301_s16), [#allocation10]  ;;  %p291_p2 = scmp.ge.s32.totalorder %s523_s24, 1 }
  0x21   : > { %s738_s17 = smov (!%p317_p13, %s302_s17), 0  ;;  %p123_p3 = scmp.lt.s32.totalorder %s523_s24, 4 }
  0x22   : > { %s109_s18 = sld [smem:[%s736_s16 + %s738_s17]]  ;;  %s108_s1 = scalar_lea.vmem [#allocation5], %s288_s14 }
  0x23   : > { %p646_p6 = pnand %p291_p2, %p123_p3  ;;  %s118_s26 = sshll.u32 %s108_s1, 4  ;;  %s119_s26 = int_to_ptr.vmem [resolvable:$true] %s118_s26 }
  0x24   : > { %s105_s7 = scalar_lea.sflag [#allocation6], %s104_s13  ;;  %p405_p7 = pneg %p635_p1 }
  0x28   : > { %s299_s28 = sshll.u32 %s109_s18, 3  ;;  %s408_s18 = scalar_lea.hbm %s717_s2, 24 }
  0x29   : > { %s114_s5 = scalar_lea.hbm %s717_s2, %s299_s28 }
  0x2a   : > { %s116_s4 = sshll.u32 %s114_s5, 4  ;;  %s117_s4 = int_to_ptr.hbm [resolvable:$true] %s116_s4 }
  0x2b   : > { %s401_s8 = sshra.s32 %s117_s4, 4  ;;  %s402_s8 = int_to_ptr.hbm [resolvable:$true] %s401_s8 }
  0x2c   : > { %s403_s16 = scalar_lea.hbm %s402_s8, 8  ;;  %p409_p10 = scmp.lt.s32.totalorder %s402_s8, %s717_s2 }
  0x2d   : > { %p404_p4 = scmp.ne.s32.totalorder %s402_s8, %s403_s16  ;;  %p410_p12 = scmp.lt.s32.totalorder %s408_s18, %s403_s16 }
  0x2f   : > { %p406_p8 = pnand %p405_p7, %p404_p4  ;;  %p411_p13 = por %p410_p12, %p409_p10 }
  0x31   : > { %p407_p9 = pneg %p406_p8 }
  0x33   : > { %p412_p2 = pnand %p411_p13, %p407_p9 }
  0x35   : > { %415 = shalt.err (!%p412_p2)
}
  0x36   : > { %312 = dma.hbm_to_vmem [thread:$0]  (!%p635_p1), %s117_s4, 128, %s119_s26, %s105_s7  }
  0x37   : > { %127 = sbr.rel (%p646_p6) target bundleno = 82 (0x52), region = 24  ;;  %s129_s13 = sand.u32 (!%p646_p6), 1, %s515_s22  }
  0x38   : > { %s292_s28 = sshll.u32 (!%p646_p6), %s129_s13, 3  ;;  %s130_s29 = scalar_lea.sflag (!%p646_p6), [#allocation6], %s129_s13 }
  0x39   : > { %s133_s30 = scalar_lea.vmem (!%p646_p6), [#allocation5], %s292_s28 }
  0x3c   : > { %490 = dma.done.wait (%p607_p5), %s130_s29, 128  }
  0x3d   : > { %492 = vsyncadd (%p607_p5), %s130_s29, 4294967168  ;;  %v154_v0 = vlaneseq  ;;  %s156_s10 = sld [smem:[#allocation3 + %s587_s25]]  ;;  %s150_s15 = sand.u32 1, %s503_s0   ;;  %v159_v3 = vld [vmem:[%s133_s30] sm:$0xff] }
  0x3e   : > { %s293_s19 = sshll.u32 %s150_s15, 5  ;;  %v162_v5 = vperm.slane %v159_v3, 1  ;;  %v178_v6 = vperm.slane %v159_v3, 0  ;;  %v163_v7 = vperm.slane %v159_v3, 3  ;;  %s300_s26 = sshll.u32 %s587_s25, 5  ;;  %v179_v8 = vperm.slane %v159_v3, 2 }
  0x3f   : > { %v155_v1 = vshrl.u32 %v154_v0, 7  ;;  %v164_v9 = vperm.slane %v159_v3, 5  ;;  %v180_v10 = vperm.slane %v159_v3, 4  ;;  %v165_v11 = vperm.slane %v159_v3, 7  ;;  %s210_s4 = scalar_lea.hbm %s718_s3, %s300_s26  ;;  %s152_s25 = scalar_lea.vmem [#allocation8], %s293_s19 }
  0x40   : > { %v170_v13 = vperm.slane %v162_v5, 1  ;;  %v186_v14 = vperm.slane %v178_v6, 0  ;;  %v171_v15 = vperm.slane %v163_v7, 1  ;;  %v187_v16 = vperm.slane %v179_v8, 0  ;;  %s212_s7 = sshll.u32 %s152_s25, 4  ;;  %s214_s8 = sshll.u32 %s210_s4, 4  ;;  %s213_s7 = int_to_ptr.vmem [resolvable:$true] %s212_s7  ;;  %s215_s8 = int_to_ptr.hbm [resolvable:$true] %s214_s8 }
  0x41   : > { %v172_v17 = vperm.slane %v164_v9, 1  ;;  %v188_v18 = vperm.slane %v180_v10, 0  ;;  %v173_v19 = vperm.slane %v165_v11, 1  ;;  %v181_v22 = vperm.slane %v159_v3, 6  ;;  %s199_s16 = scalar_lea.sflag [#allocation7], %s150_s15  ;;  %s445_s17 = sshra.s32 %s215_s8, 4  ;;  %s446_s17 = int_to_ptr.hbm [resolvable:$true] %s445_s17 }
  0x42   : > { %s447_s14 = scalar_lea.hbm %s446_s17, 32  ;;  %s451_s13 = scalar_lea.hbm %s718_s3, 96 }
  0x43   : > { %v157_v2 = vstv %s156_s10  ;;  %v189_v27 = vperm.slane %v181_v22, 0  ;;  %p448_p5 = scmp.ne.s32.totalorder %s446_s17, %s447_s14  ;;  %p452_p6 = scmp.lt.s32.totalorder %s446_s17, %s718_s3 }
  0x44   : > { %v158_v4 = vadd.s32 %v157_v2, %v155_v1  ;;  %p453_p4 = scmp.lt.s32.totalorder %s451_s13, %s447_s14 }
  0x45   : > { %p449_p1 = pnand %p448_p5, %p623_p11 }
  0x46   : > { %v160_v12 = vcvt.s32.f32 %v158_v4  ;;  %p454_p7 = por %p453_p4, %p452_p6 }
  0x47   : > { %p450_p3 = pneg %p449_p1 }
  0x48   : > { %v174_v20 = vmul.f32 %v170_v13, %v160_v12  ;;  %v175_v21 = vmul.f32 %v171_v15, %v160_v12  ;;  %v176_v23 = vmul.f32 %v172_v17, %v160_v12  ;;  %v177_v24 = vmul.f32 %v173_v19, %v160_v12 }
  0x49   : > { %p455_p8 = pnand %p454_p7, %p450_p3 }
  0x4a   : > { %v190_v25 = vadd.f32 %v186_v14, %v174_v20  ;;  %v191_v26 = vadd.f32 %v187_v16, %v175_v21  ;;  %v192_v28 = vadd.f32 %v188_v18, %v176_v23  ;;  %v193_v29 = vadd.f32 %v189_v27, %v177_v24 }
  0x4c   : > { %194 = vst [vmem:[%s152_s25] sm:$0xff] %v190_v25 }
  0x4d   : > { %195 = vst [vmem:[%s152_s25 + $0x8] sm:$0xff] %v191_v26 }
  0x4e   : > { %196 = vst [vmem:[%s152_s25 + $0x10] sm:$0xff] %v192_v28 }
  0x4f   : > { %197 = vst [vmem:[%s152_s25 + $0x18] sm:$0xff] %v193_v29 }
  0x50   : > { %458 = shalt.err (!%p455_p8)
}
  0x51   : > { %305 = dma.vmem_to_hbm [thread:$0]  (%p623_p11), %s213_s7, 512, %s215_s8, %s199_s16  }
  0x52 PF: > { %p318_p9 = scmp.ge.s32.totalorder %s523_s24, 2  ;;  %s226_s30 = sand.u32 1, %s499_s20  }
  0x53   : > { %s227_s10 = scalar_lea.sflag [#allocation7], %s226_s30 }
  0x54   : > { %p314_p10 = pnand %p318_p9, %p628_p0 }
  0x56   : > { %p315_p12 = pneg %p314_p10 }
  0x58   : > { %494 = dma.done.wait (%p315_p12), %s227_s10, 512  }
  0x59   : > { %496 = vsyncadd (%p315_p12), %s227_s10, 4294966784  ;;  %s727_s11 = sld [smem:[#allocation14_spill]]  ;;  %p29_p11 = scmp.ge.s32.totalorder %s591_s27, 5  }
  0x5a   : > { %s728_s20 = smov %s503_s0  ;;  %s729_s0 = smov %s507_s21 }
  0x5b   : > { %s730_s21 = smov %s618_s9  ;;  %s731_s1 = smov %s515_s22 }
  0x5c   : > { %s732_s22 = smov %s519_s23  ;;  %s734_s24 = smov %s591_s27 }
  0x5d   :  { %31 = sbr.rel (!%p29_p11) target bundleno = 14 (0xe), region = 69 }
  0x5f   : > { %s733_s23 = smov %s727_s11 }
  0x62   :  { %233 = vsyncpa [#allocation6], 1 }
  0x63   :  { %235 = vsyncpa [#allocation6 + $0x1], 1 }
  0x64   :  { %236 = vsyncpa [#allocation7], 1 }
  0x65   :  { %238 = vsyncpa [#allocation7 + $0x1], 1 }

</bundles_post_ra>
